<compile_context>
chip_gen: v5e
topology: v5e:2x2
jax: 0.10.0
libtpu: 0.0.40
codegen_flags: <defaults>
</compile_context>

<pallas_src>
import math
from functools import partial

import jax
import jax.numpy as jnp
import numpy as np
from jax.experimental import pallas as pl
from jax.experimental.pallas import tpu as pltpu

LOG_SIG_MIN = -20.0
LOG_SIG_MAX = 2.0
EPSILON = 1e-4            # module's epsilon (tanh correction) AND the .clamp_min on the global std
_LOG_SQRT_2PI = 0.5 * math.log(2.0 * math.pi)
SEG = 128                 # lane width; each fused-head segment starts on a 128-lane boundary


def _sde_policy_kernel(n_total_elems,
                       x_ref, w1_ref, b1_ref, w2_ref, b2_ref,
                       wh_ref, bh_ref, csum_ref,
                       out_ref, ssq_ref):
    """grid = (2, n_tiles): axis 0 = pass (0: accumulate global ssq, 1: epilogue), axis 1 = batch tile."""
    p = pl.program_id(0)
    j = pl.program_id(1)
    A = csum_ref.shape[1]

    # ---- feat_x MLP: Linear -> ReLU -> Linear (recomputed in both passes; MLP FLOPs are tiny
    #      relative to the x/out HBM streams, and stashing head tiles would defeat the VMEM cap) ----
    x = x_ref[...]
    h = jnp.maximum(jnp.dot(x, w1_ref[...], preferred_element_type=jnp.float32) + b1_ref[...], 0.0)
    feat = jnp.dot(h, w2_ref[...], preferred_element_type=jnp.float32) + b2_ref[...]
    row_mean = jnp.mean(feat, axis=-1, keepdims=True)               # [tb, 1]
    sc = feat - row_mean                                            # row-centered feat

    # ---- pass 0: accumulate batch-global sum-of-squares of the row-centered feat ----
    @pl.when(p == 0)
    def _accumulate():
        @pl.when(j == 0)
        def _():
            ssq_ref[...] = jnp.zeros_like(ssq_ref)
        ssq_ref[...] += jnp.sum(sc * sc, keepdims=True)

    # ---- pass 1: finalize inv_gstd and run the epilogue on the same tile ----
    @pl.when(p == 1)
    def _epilogue():
        # torch: sn = sc / sc.std().clamp_min(1e-4); .std() is unbiased, over ALL B*H elements.
        # inv_gstd = min(rsqrt(var), 1/eps) == 1/max(sqrt(var), eps)   (including var == 0)
        var = ssq_ref[...] * (1.0 / (n_total_elems - 1))             # (1,1)
        inv_gstd = jnp.minimum(jax.lax.rsqrt(var), 1.0 / EPSILON)    # (1,1)

        # single fused head matmul: [mean | log_std | feat @ W_sde], 128-lane-aligned segments
        head = jnp.dot(feat, wh_ref[...], preferred_element_type=jnp.float32) + bh_ref[...]
        mean = head[:, 0:A]                                          # lane offset 0   (aligned)
        log_std = jnp.clip(head[:, SEG:SEG + A], LOG_SIG_MIN, LOG_SIG_MAX)   # lane offset 128
        feat_wsde = head[:, 2 * SEG:2 * SEG + A]                     # lane offset 256 (aligned)
        std = jnp.exp(log_std)

        # (feat - row_mean) @ Wsde == feat @ Wsde - row_mean * colsum(Wsde)   (exact identity)
        sde_sample = (feat_wsde - row_mean * csum_ref[...]) * inv_gstd        # == sn @ Wsde
        x_t = mean + sde_sample * std
        action = jnp.tanh(x_t)
        mean_t = jnp.tanh(mean)

        # log N(x_t; mean, std) - log(1 - tanh(x_t)^2 + eps); (x_t-mean)/std == sde_sample,
        # log(std) == clipped log_std.
        log_prob = (-0.5 * (sde_sample * sde_sample) - log_std - _LOG_SQRT_2PI
                    - jnp.log(1.0 - action * action + EPSILON))
        logp = jnp.sum(log_prob, axis=-1, keepdims=True)             # [tb, 1]

        # lane-dense [tb, 128] slab: one full-width zero store + three slice stores
        # (no sub-vreg concatenate, no explicit pad array)
        out_ref[...] = jnp.zeros_like(out_ref)
        out_ref[:, 0:A] = action
        out_ref[:, A:2 * A] = mean_t
        out_ref[:, 2 * A:2 * A + 1] = logp


def pack_params(params):
    """One-time prep (outside the kernel): fuse + lane-align the head weights."""
    wm, bm, wsde = params["wm"], params["bm"], params["wsde"]
    h2, A = wsde.shape
    assert A <= SEG, "action dim must fit a 128-lane head segment"
    assert 2 * A + 1 <= SEG, "action dim must fit the fused 128-lane output slab"
    w_head = jnp.zeros((h2, 3 * SEG), jnp.float32)
    w_head = w_head.at[:, 0:A].set(wm[:, :A])                 # mean columns
    w_head = w_head.at[:, SEG:SEG + A].set(wm[:, A:2 * A])    # log_std columns
    w_head = w_head.at[:, 2 * SEG:2 * SEG + A].set(wsde)      # SDE columns (centered in-kernel)
    b_head = jnp.zeros((1, 3 * SEG), jnp.float32)
    b_head = b_head.at[:, 0:A].set(bm[:, :A])
    b_head = b_head.at[:, SEG:SEG + A].set(bm[:, A:2 * A])
    csum = jnp.sum(wsde, axis=0, keepdims=True)               # [1, A] column sums of Wsde
    return dict(w1=params["w1"], b1=params["b1"], w2=params["w2"], b2=params["b2"],
                w_head=w_head, b_head=b_head, csum=csum, act_dim=A)


def _choose_tile(B, max_tile):
    """Largest batch-tile that divides B and respects the (8,*) sublane rule."""
    if B <= max_tile:
        return B                                   # single tile == full dim, always legal
    t = (max_tile // 8) * 8
    while t >= 8:
        if B % t == 0:
            return t
        t -= 8
    # TODO(synk): pad + mask the ssq accumulation for batch sizes with no multiple-of-8 divisor.
    return B


def sde_gaussian_policy(x, packed, *, max_tile_b=512):
    """Returns (action [B,A], log_prob [B,1], tanh(mean) [B,A]).

    Two-pass batch grid: pass 0 accumulates the batch-global feat statistic (torch `.std()` is a
    whole-batch scalar), pass 1 streams the epilogue per tile.  Weights stay VMEM-resident; only
    x and the lane-dense output slab stream through HBM.
    """
    B, in_dim = x.shape
    A = packed["act_dim"]
    h1 = packed["w1"].shape[1]
    h2 = packed["w2"].shape[1]
    head_w = packed["w_head"].shape[1]

    tile_b = _choose_tile(B, max_tile_b)
    n_tiles = B // tile_b

    def const(shape):                              # weights: fetched once, resident across tiles
        return pl.BlockSpec(shape, lambda p, j: (0, 0))

    out = pl.pallas_call(
        partial(_sde_policy_kernel, B * h2),
        out_shape=jax.ShapeDtypeStruct((B, SEG), jnp.float32),
        grid_spec=pltpu.PrefetchScalarGridSpec(
            num_scalar_prefetch=0,
            grid=(2, n_tiles),
            in_specs=[
                pl.BlockSpec((tile_b, in_dim), lambda p, j: (j, 0)),   # stream x per tile
                const((in_dim, h1)), const((1, h1)),
                const((h1, h2)), const((1, h2)),
                const((h2, head_w)), const((1, head_w)),
                const((1, A)),
            ],
            # p*j keeps the output block resident (unwritten) through pass 0, so only the pass-1
            # result is DMA'd to HBM -> exactly one write per tile.
            out_specs=pl.BlockSpec((tile_b, SEG), lambda p, j: (p * j, 0)),
            scratch_shapes=[pltpu.VMEM((1, 1), jnp.float32)],          # global ssq accumulator
        ),
        compiler_params=pltpu.CompilerParams(
            # Pass axis carries the accumulator; tile axis is a cross-tile reduction in pass 0,
            # so both must stay "arbitrary".
            # TODO(synk): v7x megacore — make the tile axis "parallel" and merge per-core ssq partials.
            dimension_semantics=("arbitrary", "arbitrary"),
            vmem_limit_bytes=32 * 1024 * 1024,
        ),
    )(x, packed["w1"], packed["b1"], packed["w2"], packed["b2"],
      packed["w_head"], packed["b_head"], packed["csum"])

    action = out[:, :A]
    mean_t = out[:, A:2 * A]
    logp = out[:, 2 * A:2 * A + 1]
    return action, logp, mean_t


def init_params(key, in_features, hidden_sizes, out_features):
    """Deterministic synthetic init mimicking nn.Linear defaults + sde normal(0, 1/sqrt(H))."""
    h1, h2 = hidden_sizes
    ks = jax.random.split(key, 4)

    def linear(k, fan_in, fan_out):
        bound = 1.0 / math.sqrt(fan_in)
        kw, kb = jax.random.split(k)
        w = jax.random.uniform(kw, (fan_in, fan_out), jnp.float32, -bound, bound)
        b = jax.random.uniform(kb, (1, fan_out), jnp.float32, -bound, bound)
        return w, b

    w1, b1 = linear(ks[0], in_features, h1)
    w2, b2 = linear(ks[1], h1, h2)
    wm, bm = linear(ks[2], h2, 2 * out_features)
    wsde = jax.random.normal(ks[3], (h2, out_features), jnp.float32) / math.sqrt(h2)
    return dict(w1=w1, b1=b1, w2=w2, b2=b2, wm=wm, bm=bm, wsde=wsde)


def reference_forward(x, p):
    """Pure-JAX reference mirroring the PyTorch eval-mode forward (original formulation)."""
    h = jnp.maximum(x @ p["w1"] + p["b1"], 0.0)
    feat = h @ p["w2"] + p["b2"]
    logits = feat @ p["wm"] + p["bm"]
    A = p["wsde"].shape[1]
    mean, log_std = logits[:, :A], logits[:, A:]
    std = jnp.exp(jnp.clip(log_std, LOG_SIG_MIN, LOG_SIG_MAX))
    sc = feat - jnp.mean(feat, axis=-1, keepdims=True)
    n = sc.size
    gstd = jnp.sqrt(jnp.sum((sc - jnp.mean(sc)) ** 2) / (n - 1))
    sn = sc / jnp.maximum(gstd, EPSILON)
    x_t = mean + (sn @ p["wsde"]) * std
    lp = -0.5 * ((x_t - mean) / std) ** 2 - jnp.log(std) - _LOG_SQRT_2PI
    action = jnp.tanh(x_t)
    lp = lp - jnp.log(1.0 - action ** 2 + EPSILON)
    return action, jnp.sum(lp, axis=-1, keepdims=True), jnp.tanh(mean)


if __name__ == "__main__":
    # hidden_sizes=(64,32) -> hidden_dim=32, out_features=8.
    # B=64 with max_tile_b=32 -> grid (2 passes, 2 batch tiles): exercises the cross-tile global std.
    B, IN, HIDDEN, ACT = 64, 32, (64, 32), 8

    key = jax.random.PRNGKey(0)
    k_param, k_x = jax.random.split(key)
    params = init_params(k_param, IN, HIDDEN, ACT)
    packed = pack_params(params)
    x = jax.random.normal(k_x, (B, IN), jnp.float32)

    action, log_prob, mean = jax.block_until_ready(
        sde_gaussian_policy(x, packed, max_tile_b=32))

    # sanity check against pure-JAX reference (original, un-rewritten math)
    a_ref, lp_ref, m_ref = reference_forward(x, params)
    np.testing.assert_allclose(np.asarray(action), np.asarray(a_ref), rtol=1e-4, atol=1e-4)
    np.testing.assert_allclose(np.asarray(mean), np.asarray(m_ref), rtol=1e-4, atol=1e-4)
    np.testing.assert_allclose(np.asarray(log_prob), np.asarray(lp_ref), rtol=1e-3, atol=1e-3)

    assert action.shape == (B, ACT) and log_prob.shape == (B, 1) and mean.shape == (B, ACT)
    print("KERNEL_OK")
</pallas_src>

<mosaic_0001>
module attributes {stable_mosaic.version = 11 : i64} {
  func.func @_sde_policy_kernel(%arg0: i32, %arg1: i32, %arg2: memref<32x32xf32, #tpu.memory_space<vmem>>, %arg3: memref<32x64xf32, #tpu.memory_space<vmem>>, %arg4: memref<1x64xf32, #tpu.memory_space<vmem>>, %arg5: memref<64x32xf32, #tpu.memory_space<vmem>>, %arg6: memref<1x32xf32, #tpu.memory_space<vmem>>, %arg7: memref<32x384xf32, #tpu.memory_space<vmem>>, %arg8: memref<1x384xf32, #tpu.memory_space<vmem>>, %arg9: memref<1x8xf32, #tpu.memory_space<vmem>>, %arg10: memref<32x128xf32, #tpu.memory_space<vmem>>, %arg11: memref<1x1xf32, #tpu.memory_space<vmem>>) attributes {dimension_semantics = [#tpu.dimension_semantics<arbitrary>, #tpu.dimension_semantics<arbitrary>], iteration_bounds = array<i64: 2, 2>, scalar_prefetch = 0 : i64, scratch_operands = 1 : i64, tpu.core_type = #tpu.core_type<tc>, window_params = [{transform_indices = @transform_0, window_bounds = array<i64: 32, 32>}, {pipeline_mode = #tpu.pipeline_mode<synchronous>, transform_indices = @transform_1, window_bounds = array<i64: 32, 64>}, {pipeline_mode = #tpu.pipeline_mode<synchronous>, transform_indices = @transform_2, window_bounds = array<i64: 1, 64>}, {pipeline_mode = #tpu.pipeline_mode<synchronous>, transform_indices = @transform_3, window_bounds = array<i64: 64, 32>}, {pipeline_mode = #tpu.pipeline_mode<synchronous>, transform_indices = @transform_4, window_bounds = array<i64: 1, 32>}, {pipeline_mode = #tpu.pipeline_mode<synchronous>, transform_indices = @transform_5, window_bounds = array<i64: 32, 384>}, {pipeline_mode = #tpu.pipeline_mode<synchronous>, transform_indices = @transform_6, window_bounds = array<i64: 1, 384>}, {pipeline_mode = #tpu.pipeline_mode<synchronous>, transform_indices = @transform_7, window_bounds = array<i64: 1, 8>}, {transform_indices = @transform_8, window_bounds = array<i64: 32, 128>}]} {
    %c0 = arith.constant 0 : index
    %c0_0 = arith.constant 0 : index
    %0 = vector.load %arg2[%c0, %c0_0] : memref<32x32xf32, #tpu.memory_space<vmem>>, vector<32x32xf32>
    %c0_1 = arith.constant 0 : index
    %c0_2 = arith.constant 0 : index
    %1 = vector.load %arg3[%c0_1, %c0_2] : memref<32x64xf32, #tpu.memory_space<vmem>>, vector<32x64xf32>
    %cst = arith.constant dense<0.000000e+00> : vector<32x64xf32>
    %2 = tpu.matmul %0, %1, %cst {dimension_numbers = #tpu.dot_dimension_numbers<[1], [0], [0], [1], [0, 0, 1, 1], [], []>} : vector<32x32xf32>, vector<32x64xf32>, vector<32x64xf32> -> vector<32x64xf32>
    %c0_3 = arith.constant 0 : index
    %c0_4 = arith.constant 0 : index
    %3 = vector.load %arg4[%c0_3, %c0_4] : memref<1x64xf32, #tpu.memory_space<vmem>>, vector<1x64xf32>
    %4 = vector.broadcast %3 : vector<1x64xf32> to vector<32x64xf32>
    %5 = arith.addf %2, %4 : vector<32x64xf32>
    %cst_5 = arith.constant 0.000000e+00 : f32
    %6 = vector.broadcast %cst_5 : f32 to vector<32x64xf32>
    %7 = arith.maximumf %5, %6 : vector<32x64xf32>
    %c0_6 = arith.constant 0 : index
    %c0_7 = arith.constant 0 : index
    %8 = vector.load %arg5[%c0_6, %c0_7] : memref<64x32xf32, #tpu.memory_space<vmem>>, vector<64x32xf32>
    %cst_8 = arith.constant dense<0.000000e+00> : vector<32x32xf32>
    %9 = tpu.matmul %7, %8, %cst_8 {dimension_numbers = #tpu.dot_dimension_numbers<[1], [0], [0], [1], [0, 0, 1, 1], [], []>} : vector<32x64xf32>, vector<64x32xf32>, vector<32x32xf32> -> vector<32x32xf32>
    %c0_9 = arith.constant 0 : index
    %c0_10 = arith.constant 0 : index
    %10 = vector.load %arg6[%c0_9, %c0_10] : memref<1x32xf32, #tpu.memory_space<vmem>>, vector<1x32xf32>
    %11 = vector.broadcast %10 : vector<1x32xf32> to vector<32x32xf32>
    %12 = arith.addf %9, %11 : vector<32x32xf32>
    %cst_11 = arith.constant dense<0.000000e+00> : vector<32xf32>
    %13 = vector.multi_reduction <add>, %12, %cst_11 [1] : vector<32x32xf32> to vector<32xf32>
    %14 = vector.shape_cast %13 : vector<32xf32> to vector<32x1xf32>
    %cst_12 = arith.constant 3.200000e+01 : f32
    %15 = vector.broadcast %cst_12 : f32 to vector<32x1xf32>
    %16 = arith.divf %14, %15 : vector<32x1xf32>
    %17 = vector.broadcast %16 : vector<32x1xf32> to vector<32x32xf32>
    %18 = arith.subf %12, %17 : vector<32x32xf32>
    %c0_i32 = arith.constant 0 : i32
    %19 = arith.cmpi eq, %arg0, %c0_i32 : i32
    %20 = arith.extui %19 : i1 to i32
    %c0_i32_13 = arith.constant 0 : i32
    %21 = arith.cmpi ne, %20, %c0_i32_13 : i32
    scf.if %21 {
      %c0_i32_15 = arith.constant 0 : i32
      %25 = arith.cmpi eq, %arg1, %c0_i32_15 : i32
      %26 = arith.extui %25 : i1 to i32
      %c0_i32_16 = arith.constant 0 : i32
      %27 = arith.cmpi ne, %26, %c0_i32_16 : i32
      scf.if %27 {
        %cst_22 = arith.constant 0.000000e+00 : f32
        %37 = vector.broadcast %cst_22 : f32 to vector<1x1xf32>
        %c0_23 = arith.constant 0 : index
        %c0_24 = arith.constant 0 : index
        %38 = vector.load %arg11[%c0_23, %c0_24] : memref<1x1xf32, #tpu.memory_space<vmem>>, vector<1x1xf32>
        tpu.vector_store %arg11[%c0_23, %c0_24], %37 {strides = array<i32>} : memref<1x1xf32, #tpu.memory_space<vmem>>, vector<1x1xf32>,
      } else {
      }
      %c0_17 = arith.constant 0 : index
      %c0_18 = arith.constant 0 : index
      %28 = vector.load %arg11[%c0_17, %c0_18] : memref<1x1xf32, #tpu.memory_space<vmem>>, vector<1x1xf32>
      %29 = arith.mulf %18, %18 : vector<32x32xf32>
      %30 = vector.shape_cast %29 : vector<32x32xf32> to vector<1x32x32xf32>
      %cst_19 = arith.constant dense<0.000000e+00> : vector<1xf32>
      %31 = vector.multi_reduction <add>, %30, %cst_19 [1, 2] : vector<1x32x32xf32> to vector<1xf32>
      %32 = vector.shape_cast %31 : vector<1xf32> to vector<1x1x1xf32>
      %33 = vector.extract %32[0, 0, 0] : f32 from vector<1x1x1xf32>
      %34 = vector.broadcast %33 : f32 to vector<1x1xf32>
      %35 = arith.addf %28, %34 : vector<1x1xf32>
      %c0_20 = arith.constant 0 : index
      %c0_21 = arith.constant 0 : index
      %36 = vector.load %arg11[%c0_20, %c0_21] : memref<1x1xf32, #tpu.memory_space<vmem>>, vector<1x1xf32>
      tpu.vector_store %arg11[%c0_20, %c0_21], %35 {strides = array<i32>} : memref<1x1xf32, #tpu.memory_space<vmem>>, vector<1x1xf32>,
    } else {
    }
    %c1_i32 = arith.constant 1 : i32
    %22 = arith.cmpi eq, %arg0, %c1_i32 : i32
    %23 = arith.extui %22 : i1 to i32
    %c0_i32_14 = arith.constant 0 : i32
    %24 = arith.cmpi ne, %23, %c0_i32_14 : i32
    scf.if %24 {
      %c0_15 = arith.constant 0 : index
      %c0_16 = arith.constant 0 : index
      %25 = vector.load %arg11[%c0_15, %c0_16] : memref<1x1xf32, #tpu.memory_space<vmem>>, vector<1x1xf32>
      %cst_17 = arith.constant 4.88519785E-4 : f32
      %26 = vector.broadcast %cst_17 : f32 to vector<1x1xf32>
      %27 = arith.mulf %25, %26 : vector<1x1xf32>
      %28 = math.rsqrt %27 : vector<1x1xf32>
      %cst_18 = arith.constant 1.000000e+04 : f32
      %29 = vector.broadcast %cst_18 : f32 to vector<1x1xf32>
      %30 = arith.minimumf %28, %29 : vector<1x1xf32>
      %c0_19 = arith.constant 0 : index
      %c0_20 = arith.constant 0 : index
      %31 = vector.load %arg7[%c0_19, %c0_20] : memref<32x384xf32, #tpu.memory_space<vmem>>, vector<32x384xf32>
      %cst_21 = arith.constant dense<0.000000e+00> : vector<32x384xf32>
      %32 = tpu.matmul %12, %31, %cst_21 {dimension_numbers = #tpu.dot_dimension_numbers<[1], [0], [0], [1], [0, 0, 1, 1], [], []>} : vector<32x32xf32>, vector<32x384xf32>, vector<32x384xf32> -> vector<32x384xf32>
      %c0_22 = arith.constant 0 : index
      %c0_23 = arith.constant 0 : index
      %33 = vector.load %arg8[%c0_22, %c0_23] : memref<1x384xf32, #tpu.memory_space<vmem>>, vector<1x384xf32>
      %34 = vector.broadcast %33 : vector<1x384xf32> to vector<32x384xf32>
      %35 = arith.addf %32, %34 : vector<32x384xf32>
      %36 = vector.extract_strided_slice %35 {offsets = [0, 0], sizes = [32, 8], strides = [1, 1]} : vector<32x384xf32> to vector<32x8xf32>
      %37 = vector.extract_strided_slice %35 {offsets = [0, 128], sizes = [32, 8], strides = [1, 1]} : vector<32x384xf32> to vector<32x8xf32>
      %cst_24 = arith.constant -2.000000e+01 : f32
      %cst_25 = arith.constant 2.000000e+00 : f32
      %38 = vector.broadcast %cst_24 : f32 to vector<32x8xf32>
      %39 = arith.maximumf %38, %37 : vector<32x8xf32>
      %40 = vector.broadcast %cst_25 : f32 to vector<32x8xf32>
      %41 = arith.minimumf %40, %39 : vector<32x8xf32>
      %42 = vector.extract_strided_slice %35 {offsets = [0, 256], sizes = [32, 8], strides = [1, 1]} : vector<32x384xf32> to vector<32x8xf32>
      %43 = math.exp %41 : vector<32x8xf32>
      %c0_26 = arith.constant 0 : index
      %c0_27 = arith.constant 0 : index
      %44 = vector.load %arg9[%c0_26, %c0_27] : memref<1x8xf32, #tpu.memory_space<vmem>>, vector<1x8xf32>
      %45 = vector.broadcast %16 : vector<32x1xf32> to vector<32x8xf32>
      %46 = vector.broadcast %44 : vector<1x8xf32> to vector<32x8xf32>
      %47 = arith.mulf %45, %46 : vector<32x8xf32>
      %48 = arith.subf %42, %47 : vector<32x8xf32>
      %49 = vector.broadcast %30 : vector<1x1xf32> to vector<32x8xf32>
      %50 = arith.mulf %48, %49 : vector<32x8xf32>
      %51 = arith.mulf %50, %43 : vector<32x8xf32>
      %52 = arith.addf %36, %51 : vector<32x8xf32>
      %53 = math.tanh %52 : vector<32x8xf32>
      %54 = math.tanh %36 : vector<32x8xf32>
      %55 = arith.mulf %50, %50 : vector<32x8xf32>
      %cst_28 = arith.constant -5.000000e-01 : f32
      %56 = vector.broadcast %cst_28 : f32 to vector<32x8xf32>
      %57 = arith.mulf %56, %55 : vector<32x8xf32>
      %58 = arith.subf %57, %41 : vector<32x8xf32>
      %cst_29 = arith.constant 0.918938517 : f32
      %59 = vector.broadcast %cst_29 : f32 to vector<32x8xf32>
      %60 = arith.subf %58, %59 : vector<32x8xf32>
      %61 = arith.mulf %53, %53 : vector<32x8xf32>
      %cst_30 = arith.constant 1.000000e+00 : f32
      %62 = vector.broadcast %cst_30 : f32 to vector<32x8xf32>
      %63 = arith.subf %62, %61 : vector<32x8xf32>
      %cst_31 = arith.constant 9.99999974E-5 : f32
      %64 = vector.broadcast %cst_31 : f32 to vector<32x8xf32>
      %65 = arith.addf %63, %64 : vector<32x8xf32>
      %66 = math.log %65 : vector<32x8xf32>
      %67 = arith.subf %60, %66 : vector<32x8xf32>
      %cst_32 = arith.constant dense<0.000000e+00> : vector<32xf32>
      %68 = vector.multi_reduction <add>, %67, %cst_32 [1] : vector<32x8xf32> to vector<32xf32>
      %69 = vector.shape_cast %68 : vector<32xf32> to vector<32x1xf32>
      %cst_33 = arith.constant 0.000000e+00 : f32
      %70 = vector.broadcast %cst_33 : f32 to vector<32x128xf32>
      %c0_34 = arith.constant 0 : index
      %c0_35 = arith.constant 0 : index
      %71 = vector.load %arg10[%c0_34, %c0_35] : memref<32x128xf32, #tpu.memory_space<vmem>>, vector<32x128xf32>
      tpu.vector_store %arg10[%c0_34, %c0_35], %70 {strides = array<i32>} : memref<32x128xf32, #tpu.memory_space<vmem>>, vector<32x128xf32>,
      %c0_36 = arith.constant 0 : index
      %c0_37 = arith.constant 0 : index
      %72 = vector.load %arg10[%c0_36, %c0_37] : memref<32x128xf32, #tpu.memory_space<vmem>>, vector<32x8xf32>
      tpu.vector_store %arg10[%c0_36, %c0_37], %53 {strides = array<i32>} : memref<32x128xf32, #tpu.memory_space<vmem>>, vector<32x8xf32>,
      %c0_38 = arith.constant 0 : index
      %c8 = arith.constant 8 : index
      %73 = vector.load %arg10[%c0_38, %c8] : memref<32x128xf32, #tpu.memory_space<vmem>>, vector<32x8xf32>
      tpu.vector_store %arg10[%c0_38, %c8], %54 {strides = array<i32>} : memref<32x128xf32, #tpu.memory_space<vmem>>, vector<32x8xf32>,
      %c0_39 = arith.constant 0 : index
      %c16 = arith.constant 16 : index
      %74 = vector.load %arg10[%c0_39, %c16] : memref<32x128xf32, #tpu.memory_space<vmem>>, vector<32x1xf32>
      tpu.vector_store %arg10[%c0_39, %c16], %69 {strides = array<i32>} : memref<32x128xf32, #tpu.memory_space<vmem>>, vector<32x1xf32>,
    } else {
    }
    return
  }
  func.func @transform_0(%arg0: i32, %arg1: i32) -> (i32, i32) {
    %c0_i32 = arith.constant 0 : i32
    %c0_i32_0 = arith.constant 0 : i32
    return %arg1, %c0_i32 : i32, i32
  }
  func.func @transform_1(%arg0: i32, %arg1: i32) -> (i32, i32) {
    %c0_i32 = arith.constant 0 : i32
    %c0_i32_0 = arith.constant 0 : i32
    %c0_i32_1 = arith.constant 0 : i32
    return %c0_i32, %c0_i32_0 : i32, i32
  }
  func.func @transform_2(%arg0: i32, %arg1: i32) -> (i32, i32) {
    %c0_i32 = arith.constant 0 : i32
    %c0_i32_0 = arith.constant 0 : i32
    %c0_i32_1 = arith.constant 0 : i32
    return %c0_i32, %c0_i32_0 : i32, i32
  }
  func.func @transform_3(%arg0: i32, %arg1: i32) -> (i32, i32) {
    %c0_i32 = arith.constant 0 : i32
    %c0_i32_0 = arith.constant 0 : i32
    %c0_i32_1 = arith.constant 0 : i32
    return %c0_i32, %c0_i32_0 : i32, i32
  }
  func.func @transform_4(%arg0: i32, %arg1: i32) -> (i32, i32) {
    %c0_i32 = arith.constant 0 : i32
    %c0_i32_0 = arith.constant 0 : i32
    %c0_i32_1 = arith.constant 0 : i32
    return %c0_i32, %c0_i32_0 : i32, i32
  }
  func.func @transform_5(%arg0: i32, %arg1: i32) -> (i32, i32) {
    %c0_i32 = arith.constant 0 : i32
    %c0_i32_0 = arith.constant 0 : i32
    %c0_i32_1 = arith.constant 0 : i32
    return %c0_i32, %c0_i32_0 : i32, i32
  }
  func.func @transform_6(%arg0: i32, %arg1: i32) -> (i32, i32) {
    %c0_i32 = arith.constant 0 : i32
    %c0_i32_0 = arith.constant 0 : i32
    %c0_i32_1 = arith.constant 0 : i32
    return %c0_i32, %c0_i32_0 : i32, i32
  }
  func.func @transform_7(%arg0: i32, %arg1: i32) -> (i32, i32) {
    %c0_i32 = arith.constant 0 : i32
    %c0_i32_0 = arith.constant 0 : i32
    %c0_i32_1 = arith.constant 0 : i32
    return %c0_i32, %c0_i32_0 : i32, i32
  }
  func.func @transform_8(%arg0: i32, %arg1: i32) -> (i32, i32) {
    %0 = arith.muli %arg0, %arg1 : i32
    %c0_i32 = arith.constant 0 : i32
    %c0_i32_0 = arith.constant 0 : i32
    return %0, %c0_i32 : i32, i32
  }
}

</mosaic_0001>

<bundles_post_ra>
// kernel: tpu_custom_call.1
= control target key start
LH: loop header
LB: loop body
LE: loop exit
PB: predicated region body
PF: predicated region fallthrough
CT: control target
= control target key end

     0   :  { %s1542_s0 = inlined_call_operand.vmem [shape: f32[64,32], index: 0, kind: input, shape index: {}]   ;;  %s1543_s1 = inlined_call_operand.vmem [shape: f32[32,64], index: 1, kind: input, shape index: {}]   ;;  %s1544_s2 = inlined_call_operand.vmem [shape: f32[1,64], index: 2, kind: input, shape index: {}]   ;;  %s1545_s3 = inlined_call_operand.vmem [shape: f32[64,32], index: 3, kind: input, shape index: {}]   ;;  %s1546_s4 = inlined_call_operand.vmem [shape: f32[1,32], index: 4, kind: input, shape index: {}]   ;;  %s1547_s5 = inlined_call_operand.vmem [shape: f32[32,384], index: 5, kind: input, shape index: {}]   ;;  %s1548_s6 = inlined_call_operand.vmem [shape: f32[1,384], index: 6, kind: input, shape index: {}]   ;;  %s1549_s7 = inlined_call_operand.vmem [shape: f32[1,8], index: 7, kind: input, shape index: {}]   ;;  %s1550_s8 = inlined_call_operand.hbm [shape: f32[64,128], index: 8, kind: output, shape index: {}]  }
   0x1   :  { %1555 = sst [smem:[#allocation9_spill]] %s1542_s0 }
   0x2   :  { %13 = vsyncpa [#allocation4], 0 }
   0x3   :  { %15 = vsyncpa [#allocation4 + $0x1], 0  ;;  %s1196_s27 = smov 0   ;;  %s1198_s28 = smov 0  }
   0x4   :  { %s1200_s29 = smov 0   ;;  %s1202_s30 = smov 0  }
   0x5   :  { %s1204_s9 = smov 0   ;;  %s1206_s10 = smov 0  }
   0x6   :  { %s1208_s11 = smov 0   ;;  %s1210_s12 = smov 0  }
   0x7 LB: > { %1556 = sst [smem:[#allocation6_spill]] %s1138_s11  ;;  %s863_s13 = sadd.s32 4294967295, %s1142_s12   ;;  %s1142_s12 = sphi %s1210_s12, %s21_s12   ;;  %s1138_s11 = sphi %s1208_s11, %s1565_s11   ;;  %s1134_s10 = sphi %s1206_s10, %s1570_s10   ;;  %s1130_s9 = sphi %s1204_s9, %s1563_s9   ;;  %s1126_s30 = sphi %s1202_s30, %s1569_s30   ;;  %s1122_s29 = sphi %s1200_s29, %s1568_s29   ;;  %s1118_s28 = sphi %s1198_s28, %s1567_s28   ;;  %s1114_s27 = sphi %s1196_s27, %s1566_s27  }
   0x8   : > { %s864_s14 = sadd.s32 4294967294, %s1142_s12   ;;  %s30_s15 = sadd.s32 1, %s1134_s10 }
   0x9   : > { %p31_p0 = scmp.ge.s32.totalorder %s30_s15, 2  ;;  %s33_s16 = sadd.s32 1, %s1138_s11 }
   0xa   : > { %s210_s17 = smul.u32 %s1134_s10, %s1138_s11  ;;  %p225_p1 = scmp.ne.s32.totalorder %s1122_s29, %s1118_s28 }
   0xb   : > { %s1572_s15 = smov (%p31_p0, %s30_s15), 0  ;;  %s1574_s16 = smov (!%p31_p0, %s33_s16), %s1138_s11 }
   0xc   : > { %1557 = sst [smem:[#allocation7_spill]] %s1572_s15  ;;  %p226_p2 = scmp.eq.s32.totalorder %s863_s13, 3 }
   0xd   : > { %p231_p3 = scmp.ne.s32.totalorder %s1118_s28, %s1114_s27  ;;  %p35_p4 = scmp.ge.s32.totalorder %s1574_s16, 2 }
   0xe   : > { %p232_p5 = scmp.eq.s32.totalorder %s864_s14, 3  ;;  %p1249_p6 = por %p226_p2, %p225_p1 }
   0xf   : > { %p867_p7 = scmp.ge.s32.totalorder %s1142_s12, 1  ;;  %s1576_s16 = smov (%p35_p4, %s1574_s16), 0 }
  0x10   : > { %1559 = sst [smem:[#allocation8_spill]] %s1576_s16  ;;  %p1256_p8 = por %p232_p5, %p231_p3 }
  0x11   : > { %p280_p9 = scmp.lt.s32.totalorder %s1142_s12, 5  ;;  %s211_s20 = smul.u32 %s1576_s16, %s1572_s15 }
  0x12   : > { %s215_s22 = sadd.s32 1, %s1122_s29 }
  0x13   : > { %p281_p10 = pnand %p867_p7, %p280_p9  ;;  %s212_s21 = ssub.s32 %s210_s17, %s211_s20 }
  0x14   : > { %p213_p11 = scmp.eq.s32.totalorder %s212_s21, 0  ;;  %s1553_s24 = sand.u32 (!%p281_p10), 1, %s1118_s28  }
  0x15   : > { %284 = sbr.rel (%p281_p10) target bundleno = 994 (0x3e2), region = 52  ;;  %s869_s16 = sshll.u32 (!%p281_p10), %s1126_s30, 2 }
  0x16   : > { %s1265_s23 = scalar_select %p213_p11, %s1122_s29, %s215_s22  }
  0x17   : > { %s1277_s17 = sshll.u32 (!%p281_p10), %s1553_s24, 5  ;;  %p315_p12 = scmp.lt.s32.totalorder (!%p281_p10), %s869_s16, 7 }
  0x18   : > { %s1561_s0 = sld [smem:[#allocation9_spill]] (!%p281_p10)  ;;  %s1355_s24 = scalar_lea.vmem (!%p281_p10), [#allocation3], %s1277_s17 }
  0x19   : > { %p879_p13 = scmp.ne.s32.totalorder (!%p281_p10), %s1130_s9, 0 }
  0x1a   : > { %v329_v0 = vld [vmem:[%s1543_s1 + $0x18] sm:$0xff]  ;;  %v328_v1 = vld [vmem:[%s1543_s1 + $0x10] sm:$0xff]  ;;  %v327_v4 = vld [vmem:[%s1543_s1 + $0x8] sm:$0xff]  ;;  %s1578_s16 = smov (!%p315_p12, %s869_s16), 7  ;;  %vm334_vm0 = vcmask 261120   ;;  %vm392_vm1 = vcmask 523264  }
  0x1b   : > { %359 = vmatpush.msra.mxu0 %v329_v0  ;;  %904 = vmatpush.msra.mxu3 %v329_v0  ;;  %v387_v2 = vld [vmem:[%s1545_s3 + $0x38] sm:$0xff]  ;;  %v386_v3 = vld [vmem:[%s1545_s3 + $0x30] sm:$0xff]  ;;  %v385_v5 = vld [vmem:[%s1545_s3 + $0x28] sm:$0xff]  ;;  %s870_s15 = sshll.u32 %s1578_s16, 3  ;;  %v1144_v42 = vmov 32.0   ;;  %p880_p0 = scmp.ne.s32.totalorder (!%p879_p13), %s1126_s30, 0 }
  0x1c   : > { %413 = vmatpush.msra.mxu1 %v387_v2  ;;  %908 = vmatpush.msra.mxu2 %v387_v2  ;;  %v326_v6 = vld [vmem:[%s1543_s1] sm:$0xff]  ;;  %v383_v10 = vld [vmem:[%s1545_s3 + $0x18] sm:$0xff]  ;;  %v382_v13 = vld [vmem:[%s1545_s3 + $0x10] sm:$0xff]  ;;  %1010 = vrcp.f32 %v1144_v42 }
  0x1d   : > { %360 = vmatpush.msra.mxu0 %v328_v1  ;;  %905 = vmatpush.msra.mxu3 %v328_v1  ;;  %v384_v7 = vld [vmem:[%s1545_s3 + $0x20] sm:$0xff]  ;;  %v381_v14 = vld [vmem:[%s1545_s3 + $0x8] sm:$0xff] }
  0x1e   : > { %414 = vmatpush.msra.mxu1 %v386_v3  ;;  %909 = vmatpush.msra.mxu2 %v386_v3  ;;  %s318_s25 = scalar_lea.vmem %s1561_s0, %s870_s15  ;;  %v380_v15 = vld [vmem:[%s1545_s3] sm:$0xff] }
  0x1f   : > { %361 = vmatpush.msra.mxu0 %v327_v4  ;;  %906 = vmatpush.msra.mxu3 %v327_v4  ;;  %v322_v8 = vld [vmem:[%s318_s25] sm:$0xff]  ;;  %v323_v9 = vld [vmem:[%s318_s25 + $0x8] sm:$0xff]  ;;  %v324_v11 = vld [vmem:[%s318_s25 + $0x10] sm:$0xff] }
  0x20   : > { %415 = vmatpush.msra.mxu1 %v385_v5  ;;  %910 = vmatpush.msra.mxu2 %v385_v5  ;;  %v325_v12 = vld [vmem:[%s318_s25 + $0x18] sm:$0xff]  ;;  %v1008_v16 = vld [vmem:[%s1544_s2] ss:$0 sm:$0xff] }
  0x21   : > { %362 = vmatpush.msra.mxu0 %v326_v6  ;;  %907 = vmatpush.msra.mxu3 %v326_v6  ;;  %v1009_v29 = vld [vmem:[%s1546_s4] ss:$0 sm:$0xff] }
  0x22   : > { %871 = vmatmul.msk.f32.vlgmr.msra.gmra.mxu0 %vm334_vm0, %v322_v8  ;;  %872 = vmatmul.msk.f32.vlgmr.msra.gmra.mxu3 %vm334_vm0, %v323_v9  ;;  %v1011_v43 = vpop.eup %1010 }
  0x23   : > { %416 = vmatpush.msra.mxu1 %v384_v7  ;;  %911 = vmatpush.msra.mxu2 %v384_v7  ;;  %v447_v44 = vmul.f32 32.0, %v1011_v43  ;;  %vm451_vm2 = vweird.f32 %v1011_v43 }
  0x25   : > { %417 = vmatpush.msra.mxu1 %v383_v10  ;;  %912 = vmatpush.msra.mxu2 %v383_v10  ;;  %v448_v45 = vsub.f32 1.0, %v447_v44 }
  0x27   : > { %418 = vmatpush.msra.mxu1 %v382_v13  ;;  %913 = vmatpush.msra.mxu2 %v382_v13  ;;  %v449_v46 = vmul.f32 %v1011_v43, %v448_v45 }
  0x29   : > { %419 = vmatpush.msra.mxu1 %v381_v14  ;;  %914 = vmatpush.msra.mxu2 %v381_v14  ;;  %v450_v47 = vadd.f32 %v1011_v43, %v449_v46 }
  0x2a   : > { %873 = vmatmul.msk.f32.gmra.mxu3 %vm334_vm0, %v324_v11 }
  0x2b   : > { %420 = vmatpush.msra.mxu1 %v380_v15  ;;  %915 = vmatpush.msra.mxu2 %v380_v15  ;;  %v452_v48 = vsel %vm451_vm2, %v1011_v43, %v450_v47 }
  0x32   : > { %874 = vmatmul.msk.f32.gmra.mxu3 %vm334_vm0, %v325_v12 }
  0x9f   : > { %v364_v17 = vpop.f32.mrf.mxu0 }
  0xa0   : > { %v365_v18 = vadd.f32 %v1008_v16, %v364_v17 }
  0xa2   : > { %v376_v19 = vmax.f32 %v365_v18, 0.0 }
  0xa4   : > { %875 = vmatmul.msk.f32.vlgmr.msra.gmra.mxu1 %vm392_vm1, %v376_v19 }
  0xa5   : > { %v367_v20 = vpop.f32.mrf.mxu3 }
  0xa6   : > { %v368_v21 = vadd.f32 %v1008_v16, %v367_v20 }
  0xa8   : > { %v377_v22 = vmax.f32 %v368_v21, 0.0 }
  0xac   : > { %876 = vmatmul.msk.f32.gmra.mxu1 %vm392_vm1, %v377_v22 }
  0xad   : > { %v370_v23 = vpop.f32.mrf.mxu3 }
  0xae   : > { %v371_v24 = vadd.f32 %v1008_v16, %v370_v23 }
  0xb0   : > { %v378_v25 = vmax.f32 %v371_v24, 0.0 }
  0xb2   : > { %877 = vmatmul.msk.f32.vlgmr.msra.gmra.mxu2 %vm392_vm1, %v378_v25 }
  0xb5   : > { %v373_v26 = vpop.f32.mrf.mxu3 }
  0xb6   : > { %v374_v27 = vadd.f32 %v1008_v16, %v373_v26 }
  0xb8   : > { %v379_v28 = vmax.f32 %v374_v27, 0.0 }
  0xba   : > { %878 = vmatmul.msk.f32.gmra.mxu2 %vm392_vm1, %v379_v28 }
 0x121   : > { %v422_v30 = vpop.f32.mrf.mxu1 }
 0x122   : > { %v1322_v31 = vadd.f32 %v1009_v29, %v422_v30 }
 0x124   : > { %v434_v32 = vsel %vm334_vm0, %v1322_v31, 0.0 }
 0x125   : > { %435 = vadd.xlane.f32.xlu0 %v434_v32 }
 0x129   : > { %v425_v33 = vpop.f32.mrf.mxu1 }
 0x12a   : > { %v1326_v34 = vadd.f32 %v1009_v29, %v425_v33 }
 0x12c   : > { %v437_v35 = vsel %vm334_vm0, %v1326_v34, 0.0 }
 0x12d   : > { %438 = vadd.xlane.f32.xlu0 %v437_v35 }
 0x135   : > { %v428_v36 = vpop.f32.mrf.mxu2 }
 0x136   : > { %v1330_v37 = vadd.f32 %v1009_v29, %v428_v36 }
 0x138   : > { %v440_v38 = vsel %vm334_vm0, %v1330_v37, 0.0 }
 0x139   : > { %441 = vadd.xlane.f32.xlu1 %v440_v38 }
 0x13d   : > { %v431_v39 = vpop.f32.mrf.mxu2 }
 0x13e   : > { %v1334_v40 = vadd.f32 %v1009_v29, %v431_v39 }
 0x140   : > { %v443_v41 = vsel %vm334_vm0, %v1334_v40, 0.0 }
 0x141   : > { %444 = vadd.xlane.f32.xlu1 %v443_v41 }
 0x198   : > { %v436_v49 = vpop.xlane.xlu0 %435 }
 0x199   : > { %v1338_v50 = vmul.f32 %v452_v48, %v436_v49 }
 0x19b   : > { %v457_v51 = vsub.f32 %v1322_v31, %v1338_v50 }
 0x1a0   : > { %v439_v52 = vpop.xlane.xlu0 %438 }
 0x1a1   : > { %v1342_v53 = vmul.f32 %v452_v48, %v439_v52 }
 0x1a3   : > { %v458_v54 = vsub.f32 %v1326_v34, %v1342_v53 }
 0x1ac   : > { %v442_v55 = vpop.xlane.xlu1 %441 }
 0x1ad   : > { %v1346_v56 = vmul.f32 %v452_v48, %v442_v55 }
 0x1af   : > { %v459_v57 = vsub.f32 %v1330_v37, %v1346_v56 }
 0x1b3   : > { %464 = sbr.rel (%p879_p13) target bundleno = 638 (0x27e), region = 56 }
 0x1b4   : > { %v445_v58 = vpop.xlane.xlu1 %444 }
 0x1b5   : > { %v1350_v59 = vmul.f32 %v452_v48, %v445_v58 }
 0x1b7   : > { %v460_v60 = vsub.f32 %v1334_v40, %v1350_v59 }
 0x1b8   : > { %468 = sbr.rel (%p880_p0) target bundleno = 447 (0x1bf), region = 60 }
 0x1bd   : > { %vm469_vm3 = vcmask 0   ;;  %v1145_v61 = vmov 0.0  }
 0x1be   : > { %470 = vst.msk [vmem:[#allocation2] sm:$0x1] %vm469_vm3, %v1145_v61 }
 0x1bf PF: > { %v472_v62 = vmul.f32 %v457_v51, %v457_v51  ;;  %v473_v63 = vmul.f32 %v458_v54, %v458_v54  ;;  %v474_v0 = vmul.f32 %v459_v57, %v459_v57  ;;  %v475_v1 = vmul.f32 %v460_v60, %v460_v60 }
 0x1c0   : > { %vm494_vm4 = vcmask 0  }
 0x1c1   : > { %v476_v2 = vsel %vm334_vm0, %v472_v62, 0.0  ;;  %v477_v3 = vsel %vm334_vm0, %v473_v63, 0.0  ;;  %v479_v4 = vsel %vm334_vm0, %v474_v0, 0.0  ;;  %v481_v6 = vsel %vm334_vm0, %v475_v1, 0.0 }
 0x1c2   : > { %v478_v5 = vadd.f32 %v477_v3, %v476_v2 }
 0x1c4   : > { %v480_v7 = vadd.f32 %v479_v4, %v478_v5 }
 0x1c5   : > { %v471_v16 = vld [vmem:[#allocation2] sm:$0x1] }
 0x1c6   : > { %v482_v8 = vadd.f32 %v481_v6, %v480_v7 }
 0x1c8   : > { %483 = vadd.xlane.f32.xlu0 %v482_v8 }
 0x23b   : > { %v484_v9 = vpop.xlane.xlu0 %483 }
 0x23c   : > { %v485_v10 = vrot.slane %v484_v9, 4 }
 0x23e   : > { %v486_v11 = vadd.f32 %v485_v10, %v484_v9 }
 0x240   : > { %v487_v12 = vrot.slane %v486_v11, 2 }
 0x242   : > { %v488_v13 = vadd.f32 %v487_v12, %v486_v11 }
 0x244   : > { %v489_v14 = vrot.slane %v488_v13, 1 }
 0x246   : > { %v490_v15 = vadd.f32 %v489_v14, %v488_v13 }
 0x248   : > { %928 = vpush %v490_v15 }
 0x279   : > { %s929_s17 = spop %928 }
 0x27a   : > { %v492_v17 = vstv %s929_s17 }
 0x27b   : > { %v493_v18 = vadd.f32 %v492_v17, %v471_v16 }
 0x27d   : > { %495 = vst.msk [vmem:[#allocation2] sm:$0x1] %vm494_vm4, %v493_v18 }
 0x27e PF: > { %p881_p1 = scmp.ne.s32.totalorder %s1130_s9, 1 }
 0x27f   : > { %s1148_s22 = smov (!%p881_p1), 8  }
 0x280   : > { %499 = sbr.rel (%p881_p1) target bundleno = 976 (0x3d0), region = 64 }
 0x285   : > { %v522_v19 = vld [vmem:[%s1547_s5 + $0x48] sm:$0xff]  ;;  %v523_v20 = vld [vmem:[%s1547_s5 + $0x50] sm:$0xff]  ;;  %v524_v21 = vld [vmem:[%s1547_s5 + $0x58] sm:$0xff]  ;;  %v1146_v35 = vmov 0   ;;  %v1147_v46 = vmov 0.0   ;;  %vm726_vm8 = vcmask 64512  }
 0x286   : > { %557 = vmatpush.msra.mxu0 %v522_v19  ;;  %916 = vmatpush.msra.mxu3 %v522_v19  ;;  %v519_v22 = vld [vmem:[%s1547_s5 + $0x30] sm:$0xff]  ;;  %v520_v23 = vld [vmem:[%s1547_s5 + $0x38] sm:$0xff]  ;;  %v521_v24 = vld [vmem:[%s1547_s5 + $0x40] sm:$0xff]  ;;  %739 = vst [vmem:[%s1355_s24] sm:$0xff] %v1147_v46  ;;  %vm763_vm9 = vcmask 130112   ;;  %vm768_vm10 = vcmask 138368  }
 0x287   : > { %920 = vmatpush.msra.mxu1 %v523_v20  ;;  %924 = vmatpush.msra.mxu2 %v524_v21  ;;  %v516_v25 = vld [vmem:[%s1547_s5 + $0x18] sm:$0xff]  ;;  %v517_v26 = vld [vmem:[%s1547_s5 + $0x20] sm:$0xff]  ;;  %v518_v27 = vld [vmem:[%s1547_s5 + $0x28] sm:$0xff]  ;;  %740 = vst [vmem:[%s1355_s24 + $0x8] sm:$0xff] %v1147_v46 }
 0x288   : > { %558 = vmatpush.msra.mxu0 %v519_v22  ;;  %917 = vmatpush.msra.mxu3 %v519_v22  ;;  %v513_v28 = vld [vmem:[%s1547_s5] sm:$0xff]  ;;  %v514_v30 = vld [vmem:[%s1547_s5 + $0x8] sm:$0xff]  ;;  %v515_v32 = vld [vmem:[%s1547_s5 + $0x10] sm:$0xff]  ;;  %741 = vst [vmem:[%s1355_s24 + $0x10] sm:$0xff] %v1147_v46 }
 0x289   : > { %921 = vmatpush.msra.mxu1 %v520_v23  ;;  %925 = vmatpush.msra.mxu2 %v521_v24  ;;  %v500_v29 = vld [vmem:[#allocation2] sm:$0x1]  ;;  %742 = vst [vmem:[%s1355_s24 + $0x18] sm:$0xff] %v1147_v46 }
 0x28a   : > { %559 = vmatpush.msra.mxu0 %v516_v25  ;;  %918 = vmatpush.msra.mxu3 %v516_v25  ;;  %v501_v33 = vmul.f32 0.0004885198, %v500_v29  ;;  %v525_v45 = vld [vmem:[%s1548_s6] sm:$0x7] }
 0x28b   : > { %922 = vmatpush.msra.mxu1 %v517_v26  ;;  %926 = vmatpush.msra.mxu2 %v518_v27  ;;  %v1428_v47 = vperm.slane %v525_v45, 0  ;;  %v528_v48 = vperm.slane %v525_v45, 1  ;;  %v1013_v52 = vld [vmem:[%s1549_s7] ss:$0 sm:$0xff]  ;;  %v529_v55 = vperm.slane %v525_v45, 2 }
 0x28c   : > { %560 = vmatpush.msra.mxu0 %v513_v28  ;;  %919 = vmatpush.msra.mxu3 %v513_v28  ;;  %1014 = vrsqrt.f32 %v501_v33  ;;  %vm508_vm5 = vweird.f32 %v501_v33  ;;  %v653_v61 = vmul.f32 %v1013_v52, %v1342_v53  ;;  %v654_v17 = vmul.f32 %v1013_v52, %v1346_v56 }
 0x28d   : > { %923 = vmatpush.msra.mxu1 %v514_v30  ;;  %927 = vmatpush.msra.mxu2 %v515_v32  ;;  %v652_v18 = vmul.f32 %v1013_v52, %v1338_v50 }
 0x28e   : > { %882 = vmatmul.msk.f32.vlgmr.msra.gmra.mxu0 %vm334_vm0, %v1322_v31  ;;  %883 = vmatmul.msk.f32.vlgmr.msra.gmra.mxu3 %vm334_vm0, %v1326_v34 }
 0x28f   : > { %887 = vmatmul.msk.f32.vlgmr.msra.gmra.mxu1 %vm334_vm0, %v1326_v34  ;;  %891 = vmatmul.msk.f32.vlgmr.msra.gmra.mxu2 %vm334_vm0, %v1326_v34 }
 0x290   : > { %586 = vmatpush.msrb.mxu0 %v523_v20  ;;  %1012 = vset.pattern.permute.xlu0 %v1146_v35 }
 0x292   : > { %v1015_v36 = vpop.eup %1014  ;;  %587 = vmatpush.msrb.mxu0 %v520_v23 }
 0x293   : > { %v503_v38 = vmul.f32 %v1015_v36, %v501_v33  ;;  %vm509_vm6 = vweird.f32 %v1015_v36 }
 0x294   : > { %588 = vmatpush.msrb.mxu0 %v517_v26  ;;  %vm510_vm7 = vmor %vm508_vm5, %vm509_vm6 }
 0x295   : > { %v504_v39 = vmul.f32 %v1015_v36, %v503_v38 }
 0x296   : > { %589 = vmatpush.msrb.mxu0 %v514_v30  ;;  %884 = vmatmul.msk.f32.gmra.mxu3 %vm334_vm0, %v1330_v37 }
 0x297   : > { %886 = vmatmul.msk.f32.vlgmr.msrb.gmra.mxu0 %vm334_vm0, %v1322_v31  ;;  %888 = vmatmul.msk.f32.gmra.mxu1 %vm334_vm0, %v1330_v37  ;;  %v505_v41 = vmul.f32 0.5, %v504_v39 }
 0x298   : > { %892 = vmatmul.msk.f32.gmra.mxu2 %vm334_vm0, %v1330_v37  ;;  %615 = vmatpush.msra.mxu0 %v524_v21 }
 0x299   : > { %v506_v34 = vsub.f32 1.5, %v505_v41 }
 0x29a   : > { %616 = vmatpush.msra.mxu0 %v521_v24 }
 0x29b   : > { %v507_v42 = vmul.f32 %v1015_v36, %v506_v34 }
 0x29c   : > { %617 = vmatpush.msra.mxu0 %v518_v27 }
 0x29d   : > { %v511_v43 = vsel %vm510_vm7, %v1015_v36, %v507_v42 }
 0x29e   : > { %618 = vmatpush.msra.mxu0 %v515_v32  ;;  %v512_v44 = vmin.f32 %v511_v43, 10000.0  ;;  %885 = vmatmul.msk.f32.gmra.mxu3 %vm334_vm0, %v1334_v40  ;;  %v655_v32 = vmul.f32 %v1013_v52, %v1350_v59 }
 0x29f   : > { %889 = vmatmul.msk.f32.gmra.mxu1 %vm334_vm0, %v1334_v40  ;;  %890 = vmatmul.msk.f32.vlgmr.msra.gmra.mxu0 %vm334_vm0, %v1322_v31 }
 0x2a0   : > { %893 = vmatmul.msk.f32.gmra.mxu2 %vm334_vm0, %v1334_v40  ;;  %v661_v37 = vperm.slane %v512_v44, 0 }
 0x2a2   : > { %663 = vperm.xlu0 %1012, %v661_v37  }
 0x30b   : > { %v562_v49 = vpop.f32.mrf.mxu0 }
 0x30c   : > { %v1434_v31 = vadd.f32 %v562_v49, %v1428_v47  ;;  %v594_v51 = vpop.f32.mrf.mxu1 }
 0x30d   : > { %v595_v40 = vadd.f32 %v594_v51, %v528_v48 }
 0x30e   : > { %1016 = vtanh.f32 %v1434_v31 }
 0x30f   : > { %v633_v54 = vmax.f32 %v595_v40, -20.0 }
 0x311   : > { %v1440_v57 = vmin.f32 %v633_v54, 2.0  ;;  %v565_v58 = vpop.f32.mrf.mxu3 }
 0x312   : > { %v623_v60 = vpop.f32.mrf.mxu2  ;;  %v1455_v19 = vadd.f32 %v565_v58, %v1428_v47 }
 0x313   : > { %v642_v62 = vmul.f32 1.442695, %v1440_v57  ;;  %v624_v63 = vadd.f32 %v623_v60, %v529_v55 }
 0x314   : > { %v1017_v0 = vpop.eup %1016  ;;  %v591_v1 = vpop.f32.mrf.mxu0 }
 0x315   : > { %v597_v2 = vpop.f32.mrf.mxu1  ;;  %1018 = vpow2.f32 %v642_v62  ;;  %v592_v3 = vadd.f32 %v591_v1, %v528_v48  ;;  %751 = vrot.lane.b32.xlu2 %v1017_v0, %s1148_s22  ;;  %v657_v5 = vsub.f32 %v624_v63, %v653_v61  ;;  %v664_v8 = vpop.permute.xlu0 %663 }
 0x316   : > { %v598_v4 = vadd.f32 %v597_v2, %v528_v48 }
 0x317   : > { %v632_v6 = vmax.f32 %v592_v3, -20.0  ;;  %v667_v11 = vmul.f32 %v664_v8, %v657_v5 }
 0x318   : > { %v634_v7 = vmax.f32 %v598_v4, -20.0 }
 0x319   : > { %v1445_v9 = vmin.f32 %v632_v6, 2.0  ;;  %v568_v53 = vpop.f32.mrf.mxu3  ;;  %v687_v46 = vmul.f32 %v667_v11, %v667_v11 }
 0x31a   : > { %v1447_v10 = vmin.f32 %v634_v7, 2.0  ;;  %v569_v12 = vadd.f32 %v568_v53, %v1428_v47 }
 0x31b   : > { %v1019_v13 = vpop.eup %1018  ;;  %v640_v14 = vmul.f32 1.442695, %v1445_v9  ;;  %v626_v16 = vpop.f32.mrf.mxu2  ;;  %v691_v54 = vmul.f32 -0.5, %v687_v46 }
 0x31c   : > { %v644_v15 = vmul.f32 1.442695, %v1447_v10  ;;  %v671_v20 = vmul.f32 %v1019_v13, %v667_v11  ;;  %1020 = vtanh.f32 %v569_v12  ;;  %v627_v21 = vadd.f32 %v626_v16, %v529_v55  ;;  %v620_v23 = vpop.f32.mrf.mxu0 }
 0x31d   : > { %v600_v22 = vpop.f32.mrf.mxu1  ;;  %1022 = vpow2.f32 %v640_v14  ;;  %v621_v25 = vadd.f32 %v620_v23, %v529_v55  ;;  %v695_v62 = vsub.f32 %v691_v54, %v1440_v57 }
 0x31e   : > { %v601_v24 = vadd.f32 %v600_v22, %v528_v48  ;;  %1024 = vpow2.f32 %v644_v15  ;;  %v675_v26 = vadd.f32 %v671_v20, %v1455_v19  ;;  %v658_v27 = vsub.f32 %v627_v21, %v654_v17 }
 0x31f   : > { %v656_v29 = vsub.f32 %v621_v25, %v652_v18  ;;  %v895_v5 = vadd.f32 -0.9189385, %v695_v62 }
 0x320   : > { %v635_v28 = vmax.f32 %v601_v24, -20.0  ;;  %1026 = vtanh.f32 %v675_v26  ;;  %v668_v35 = vmul.f32 %v664_v8, %v658_v27 }
 0x321   : > { %v666_v50 = vmul.f32 %v664_v8, %v656_v29  ;;  %v571_v59 = vpop.f32.mrf.mxu3 }
 0x322   : > { %v1458_v56 = vmin.f32 %v635_v28, 2.0  ;;  %v1021_v30 = vpop.eup %1020  ;;  %v572_v40 = vadd.f32 %v571_v59, %v1428_v47  ;;  %v688_v47 = vmul.f32 %v668_v35, %v668_v35 }
 0x323   : > { %v1023_v33 = vpop.eup %1022  ;;  %v629_v38 = vpop.f32.mrf.mxu2  ;;  %755 = vrot.lane.b32.xlu2 %v1021_v30, %s1148_s22  ;;  %v686_v0 = vmul.f32 %v666_v50, %v666_v50 }
 0x324   : > { %v646_v36 = vmul.f32 1.442695, %v1458_v56  ;;  %v1025_v39 = vpop.eup %1024  ;;  %v670_v41 = vmul.f32 %v1023_v33, %v666_v50  ;;  %v630_v34 = vadd.f32 %v629_v38, %v529_v55  ;;  %v692_v11 = vmul.f32 -0.5, %v688_v47 }
 0x325   : > { %v672_v42 = vmul.f32 %v1025_v39, %v668_v35  ;;  %v690_v53 = vmul.f32 -0.5, %v686_v0 }
 0x326   : > { %1028 = vpow2.f32 %v646_v36  ;;  %v1027_v43 = vpop.eup %1026  ;;  %v674_v44 = vadd.f32 %v670_v41, %v1434_v31  ;;  %v659_v37 = vsub.f32 %v630_v34, %v655_v32  ;;  %v696_v17 = vsub.f32 %v692_v11, %v1447_v10 }
 0x327   : > { %v676_v45 = vadd.f32 %v672_v42, %v569_v12  ;;  %v703_v48 = vmul.f32 %v1027_v43, %v1027_v43  ;;  %744 = vst.msk [vmem:[%s1355_s24 + $0x8] sm:$0xff] %vm726_vm8, %v1027_v43  ;;  %v694_v15 = vsub.f32 %v690_v53, %v1445_v9 }
 0x328   : > { %1030 = vtanh.f32 %v674_v44  ;;  %v669_v51 = vmul.f32 %v664_v8, %v659_v37  ;;  %v896_v25 = vadd.f32 -0.9189385, %v696_v17 }
 0x329   : > { %1032 = vtanh.f32 %v676_v45  ;;  %v707_v49 = vsub.f32 1.0, %v703_v48  ;;  %v894_v23 = vadd.f32 -0.9189385, %v694_v15 }
 0x32a   : > { %v689_v16 = vmul.f32 %v669_v51, %v669_v51 }
 0x32b   : > { %v711_v55 = vadd.f32 0.0001, %v707_v49 }
 0x32c   : > { %v1029_v52 = vpop.eup %1028  ;;  %v693_v27 = vmul.f32 -0.5, %v689_v16 }
 0x32d   : > { %v673_v58 = vmul.f32 %v1029_v52, %v669_v51  ;;  %1034 = vlog2.f32 %v711_v55 }
 0x32e   : > { %v1031_v31 = vpop.eup %1030  ;;  %v697_v30 = vsub.f32 %v693_v27, %v1458_v56 }
 0x32f   : > { %v677_v60 = vadd.f32 %v673_v58, %v572_v40  ;;  %v1033_v61 = vpop.eup %1032  ;;  %v702_v63 = vmul.f32 %v1031_v31, %v1031_v31  ;;  %743 = vst.msk [vmem:[%s1355_s24] sm:$0xff] %vm726_vm8, %v1031_v31 }
 0x330   : > { %v704_v1 = vmul.f32 %v1033_v61, %v1033_v61  ;;  %745 = vst.msk [vmem:[%s1355_s24 + $0x10] sm:$0xff] %vm726_vm8, %v1033_v61  ;;  %v897_v33 = vadd.f32 -0.9189385, %v697_v30 }
 0x331   : > { %1036 = vtanh.f32 %v677_v60  ;;  %v706_v2 = vsub.f32 1.0, %v702_v63 }
 0x332   : > { %v708_v3 = vsub.f32 1.0, %v704_v1 }
 0x333   : > { %v1035_v4 = vpop.eup %1034  ;;  %v710_v6 = vadd.f32 0.0001, %v706_v2 }
 0x334   : > { %v717_v7 = vmul.f32 0.6931472, %v1035_v4  ;;  %v712_v8 = vadd.f32 0.0001, %v708_v3 }
 0x335   : > { %1038 = vlog2.f32 %v710_v6 }
 0x336   : > { %v723_v12 = vsub.f32 %v895_v5, %v717_v7  ;;  %1040 = vlog2.f32 %v712_v8 }
 0x337   : > { %v1037_v57 = vpop.eup %1036 }
 0x338   : > { %v705_v13 = vmul.f32 %v1037_v57, %v1037_v57  ;;  %746 = vst.msk [vmem:[%s1355_s24 + $0x18] sm:$0xff] %vm726_vm8, %v1037_v57  ;;  %v730_v14 = vsel %vm726_vm8, %v723_v12, 0.0 }
 0x339   : > { %731 = vadd.xlane.f32.xlu1 %v730_v14 }
 0x33a   : > { %v709_v18 = vsub.f32 1.0, %v705_v13 }
 0x33b   : > { %v1039_v20 = vpop.eup %1038 }
 0x33c   : > { %v713_v21 = vadd.f32 0.0001, %v709_v18  ;;  %v1041_v22 = vpop.eup %1040  ;;  %v715_v24 = vmul.f32 0.6931472, %v1039_v20 }
 0x33d   : > { %v719_v26 = vmul.f32 0.6931472, %v1041_v22 }
 0x33e   : > { %1042 = vlog2.f32 %v713_v21  ;;  %v722_v28 = vsub.f32 %v894_v23, %v715_v24 }
 0x33f   : > { %v724_v29 = vsub.f32 %v896_v25, %v719_v26  ;;  %1044 = vtanh.f32 %v1455_v19 }
 0x340   : > { %v727_v50 = vsel %vm726_vm8, %v722_v28, 0.0  ;;  %1046 = vtanh.f32 %v572_v40 }
 0x341   : > { %v733_v9 = vsel %vm726_vm8, %v724_v29, 0.0  ;;  %728 = vadd.xlane.f32.xlu0 %v727_v50 }
 0x342   : > { %734 = vadd.xlane.f32.xlu1 %v733_v9 }
 0x344   : > { %v1043_v10 = vpop.eup %1042 }
 0x345   : > { %v721_v32 = vmul.f32 0.6931472, %v1043_v10  ;;  %v1045_v38 = vpop.eup %1044 }
 0x346   : > { %v1047_v56 = vpop.eup %1046 }
 0x347   : > { %v725_v35 = vsub.f32 %v897_v33, %v721_v32 }
 0x349   : > { %v736_v36 = vsel %vm726_vm8, %v725_v35, 0.0 }
 0x34c   : > { %737 = vadd.xlane.f32.xlu2 %v736_v36 }
 0x35b   : > { %753 = vrot.lane.b32.xlu1 %v1045_v38, %s1148_s22 }
 0x364   : > { %757 = vrot.lane.b32.xlu2 %v1047_v56, %s1148_s22 }
 0x36f   : > { %v752_v39 = vpop.permute.xlu2 %751 }
 0x370   : > { %764 = vst.msk [vmem:[%s1355_s24] sm:$0xff] %vm763_vm9, %v752_v39 }
 0x37d   : > { %v756_v41 = vpop.permute.xlu2 %755 }
 0x37e   : > { %766 = vst.msk [vmem:[%s1355_s24 + $0x10] sm:$0xff] %vm763_vm9, %v756_v41 }
 0x3ac   : > { %v732_v19 = vpop.xlane.xlu1 %731 }
 0x3b4   : > { %v729_v34 = vpop.xlane.xlu0 %728 }
 0x3b5   : > { %v735_v42 = vpop.xlane.xlu1 %734  ;;  %769 = vst.msk [vmem:[%s1355_s24] sm:$0xff] %vm768_vm10, %v729_v34 }
 0x3b6   : > { %771 = vst.msk [vmem:[%s1355_s24 + $0x10] sm:$0xff] %vm768_vm10, %v735_v42 }
 0x3bf   : > { %v738_v43 = vpop.xlane.xlu2 %737 }
 0x3c7   : > { %v758_v44 = vpop.permute.xlu2 %757 }
 0x3c8   : > { %767 = vst.msk [vmem:[%s1355_s24 + $0x18] sm:$0xff] %vm763_vm9, %v758_v44 }
 0x3c9   : > { %772 = vst.msk [vmem:[%s1355_s24 + $0x18] sm:$0xff] %vm768_vm10, %v738_v43 }
 0x3cd   : > { %v754_v37 = vpop.permute.xlu1 %753 }
 0x3ce   : > { %765 = vst.msk [vmem:[%s1355_s24 + $0x8] sm:$0xff] %vm763_vm9, %v754_v37 }
 0x3cf   : > { %770 = vst.msk [vmem:[%s1355_s24 + $0x8] sm:$0xff] %vm768_vm10, %v732_v19 }
 0x3d0 PF: > { %s781_s25 = smul.u32 %s1126_s30, %s1130_s9  ;;  %s787_s26 = sshll.u32 %s1355_s24, 4  ;;  %s788_s26 = int_to_ptr.vmem [resolvable:$true] %s787_s26 }
 0x3d1   : > { %s1562_s20 = sand.u32 1, %s1118_s28   ;;  %s1068_s9 = scalar_lea.hbm %s1550_s8, 64 }
 0x3d2   : > { %s903_s16 = sshll.u32 %s781_s25, 5  ;;  %s774_s15 = scalar_lea.sflag [#allocation4], %s1562_s20 }
 0x3d3   : > { %s786_s13 = scalar_lea.hbm %s1550_s8, %s903_s16 }
 0x3d4   : > { %s789_s14 = sshll.u32 %s786_s13, 4  ;;  %s790_s14 = int_to_ptr.hbm [resolvable:$true] %s789_s14 }
 0x3d5   : > { %s1062_s21 = sshra.s32 %s790_s14, 4  ;;  %s1063_s21 = int_to_ptr.hbm [resolvable:$true] %s1062_s21 }
 0x3d6   : > { %s1064_s22 = scalar_lea.hbm %s1063_s21, 32  ;;  %p1069_p5 = scmp.lt.s32.totalorder %s1063_s21, %s1550_s8 }
 0x3d7   : > { %p1065_p2 = scmp.ne.s32.totalorder %s1063_s21, %s1064_s22  ;;  %p1070_p7 = scmp.lt.s32.totalorder %s1068_s9, %s1064_s22 }
 0x3d9   : > { %p1066_p3 = pnand %p1065_p2, %p1249_p6  ;;  %p1071_p9 = por %p1070_p7, %p1069_p5 }
 0x3db   : > { %p1067_p4 = pneg %p1066_p3 }
 0x3dd   : > { %p1072_p10 = pnand %p1071_p9, %p1067_p4 }
 0x3df   : > { %1075 = shalt.err (!%p1072_p10)
}
 0x3e0   : > { %s1149_s16 = smov 128   ;;  %s1150_s17 = smov 8  }
 0x3e1   : > { %930 = dma.vmem_to_hbm [thread:$0]  (%p1249_p6), %s788_s26, 512, %s790_s14, %s774_s15, %s1149_s16, %s1149_s16, %s1150_s17  }
 0x3e2 PF: > { %p936_p11 = scmp.ge.s32.totalorder %s1142_s12, 2  ;;  %s804_s0 = sand.u32 1, %s1114_s27  }
 0x3e3   : > { %s805_s11 = scalar_lea.sflag [#allocation4], %s804_s0 }
 0x3e4   : > { %p933_p12 = pnand %p936_p11, %p1256_p8 }
 0x3e6   : > { %p934_p13 = pneg %p933_p12 }
 0x3e8   : > { %1109 = dma.done.wait (%p934_p13), %s805_s11, 512  }
 0x3e9   : > { %1111 = vsyncadd (%p934_p13), %s805_s11, 4294966784  ;;  %s21_s12 = sadd.s32 1, %s1142_s12   ;;  %s1563_s9 = sld [smem:[#allocation6_spill]] }
 0x3ea   : > { %p18_p0 = scmp.ge.s32.totalorder %s21_s12, 6   ;;  %s1564_s18 = sld [smem:[#allocation7_spill]] }
 0x3eb   : > { %s1565_s11 = sld [smem:[#allocation8_spill]]  ;;  %s1566_s27 = smov %s1118_s28 }
 0x3ec   : > { %s1567_s28 = smov %s1122_s29  ;;  %s1568_s29 = smov %s1265_s23 }
 0x3ed   : > { %s1569_s30 = smov %s1134_s10  ;;  %20 = sbr.rel (!%p18_p0) target bundleno = 7 (0x7), region = 99 }
 0x3f0   : > { %s1570_s10 = smov %s1564_s18 }
 0x3f2   :  { %811 = vsyncpa [#allocation4], 1 }
 0x3f3   :  { %813 = vsyncpa [#allocation4 + $0x1], 1 }

</bundles_post_ra>
